<compile_context>
chip_gen: v7x
topology: tpu7x:2x2x1
jax: 0.10.0
libtpu: 0.0.40
codegen_flags: <defaults>
</compile_context>

<pallas_src>
import functools

import jax
import jax.numpy as jnp
from jax.experimental import pallas as pl
from jax.experimental.pallas import tpu as pltpu

MARGIN = 0.3      # MultiTripletLoss default
EPS = 1e-12       # F.normalize eps

# Lane-dense per-pair output block (8 sublanes x 128 lanes): unmasked stores on
# every generation; the wrapper reads element [0, 0] of each block.
_OUT_SUB, _OUT_LANE = 8, 128


def _pair_triplet_kernel(src_idx_ref, tgt_idx_ref, im_ref, rec_ref, out_ref, *,
                         margin):
    """One (src, tgt) modality pair per grid step; writes that pair's loss."""
    del src_idx_ref, tgt_idx_ref   # consumed by the BlockSpec index_maps
    im = im_ref[...].astype(jnp.float32)      # (B, D)
    rec = rec_ref[...].astype(jnp.float32)    # (B, D)
    B = im.shape[0]

    # F.normalize denominators as inverse norms 1/max(||x||, eps), computed with
    # rsqrt (EUP slot, effectively free) instead of (B, D) element-wise divides.
    inv_im = jax.lax.rsqrt(
        jnp.maximum(jnp.sum(im * im, axis=-1, keepdims=True), EPS * EPS))    # (B,1)
    inv_rec = jax.lax.rsqrt(
        jnp.maximum(jnp.sum(rec * rec, axis=-1, keepdims=True), EPS * EPS))  # (B,1)

    # Gram matrix on RAW inputs (MXU can start immediately, contracting the
    # shared last dim -> no explicit transpose); normalization is applied as a
    # rank-1 rescale of the (B,B) result, cheaper than two (B,D) divides.
    # TODO(synk): for very large B*D add a D-tiling grid axis accumulating `raw`
    # and the squared-norm partials in VMEM scratch (v7x only has 64 MiB VMEM).
    raw = jax.lax.dot_general(
        im, rec, dimension_numbers=(((1,), (1,)), ((), ())),
        preferred_element_type=jnp.float32)                                  # (B,B)
    sim = raw * inv_im * inv_rec.reshape(1, B)        # == im_n @ rec_n.T

    # Positive-pair similarities (diag of `sim`) via a VPU row-wise dot; no XLU
    # diag extraction, overlaps with the MXU work.
    diag = jnp.sum(im * rec, axis=-1, keepdims=True) * inv_im * inv_rec      # (B,1)

    # scores = 1 - sim, d1 = 1 - diag  =>  d1 - scores == sim - diag, so the
    # MarginRankingLoss terms come straight from `sim` (no `1 - x` passes).
    cost_im = jnp.maximum(0.0, sim - diag + margin)                 # relu(d1 - scores + m)
    cost_rec = jnp.maximum(0.0, sim - diag.reshape(1, B) + margin)  # relu(d2 - scores + m)

    # Exact diagonal masking, same as masked_fill_(pos, 0) in the reference.
    rows = jax.lax.broadcasted_iota(jnp.int32, (B, B), 0)
    cols = jax.lax.broadcasted_iota(jnp.int32, (B, B), 1)
    pair_sum = jnp.sum(jnp.where(rows != cols, cost_im + cost_rec, 0.0))

    pair_loss = pair_sum / jnp.float32(B - 1)   # B==1 -> inf/nan, matches torch
    out_ref[...] = jnp.full(out_ref.shape, pair_loss, dtype=out_ref.dtype)


def _enumerate_pairs(keys):
    """Replicates MultiTripletLoss.forward's pair selection, including the
    mutate-while-iterating behavior of `keys.remove(src_key)`."""
    keys = list(keys)
    pairs = []
    for src_key in keys:
        keys.remove(src_key)
        if not len(keys):
            break
        for tgt_key in keys:
            pairs.append((src_key, tgt_key))
    return pairs


def multi_triplet_loss(target_dict, margin=MARGIN):
    """target_dict: {modality: (B, D) array} -> scalar f32 loss."""
    names = list(target_dict.keys())
    pairs = _enumerate_pairs(names)
    count = len(pairs)
    if count == 0:
        # torch would compute 0.0 / 0 -> nan for a single-modality dict
        return jnp.float32(jnp.nan)

    # One copy of each modality in HBM (no duplicated (P,B,D) src/tgt stacks);
    # the pair selection happens in the BlockSpec index_maps via two
    # scalar-prefetched int32 index vectors.
    stack = jnp.stack([jnp.asarray(target_dict[n]) for n in names], axis=0)  # (M,B,D)
    M, B, D = stack.shape
    name_to_idx = {n: i for i, n in enumerate(names)}
    src_idx = jnp.asarray([name_to_idx[s] for s, _ in pairs], dtype=jnp.int32)
    tgt_idx = jnp.asarray([name_to_idx[t] for _, t in pairs], dtype=jnp.int32)
    P = count

    # Per-step VMEM: 2 inputs x 2 pipeline buffers x (B,D) f32 blocks, a few
    # (B,B) f32 intermediates, plus the small lane-dense output block.  Cap at
    # 32 MiB, the safe scoped default on every generation (v7x physical: 64 MiB).
    need = 4 * (2 * 2 * B * D + 8 * B * B + 4 * _OUT_SUB * _OUT_LANE) + (1 << 20)
    vmem_limit = int(min(32 * 1024 * 1024, max(need, 2 * 1024 * 1024)))

    grid_spec = pltpu.PrefetchScalarGridSpec(
        num_scalar_prefetch=2,
        grid=(P,),
        in_specs=[
            pl.BlockSpec((None, B, D), lambda p, s, t: (s[p], 0, 0)),
            pl.BlockSpec((None, B, D), lambda p, s, t: (t[p], 0, 0)),
        ],
        out_specs=pl.BlockSpec((None, _OUT_SUB, _OUT_LANE),
                               lambda p, s, t: (p, 0, 0)),
    )

    out = pl.pallas_call(
        functools.partial(_pair_triplet_kernel, margin=margin),
        out_shape=jax.ShapeDtypeStruct((P, _OUT_SUB, _OUT_LANE), jnp.float32),
        grid_spec=grid_spec,
        # Per-pair output blocks are independent, so the pair axis is "parallel"
        # (sharded across v7x's two TensorCores; no-op on single-TC v5e/v6e).
        compiler_params=pltpu.CompilerParams(
            dimension_semantics=("parallel",),
            vmem_limit_bytes=vmem_limit),
        cost_estimate=pl.CostEstimate(
            flops=int(P * (2 * B * B * D + 6 * B * D + 10 * B * B)),
            transcendentals=int(2 * P * B),
            bytes_accessed=int(4 * (2 * P * B * D
                                    + P * _OUT_SUB * _OUT_LANE + 2 * P))),
    )(src_idx, tgt_idx, stack, stack)

    return jnp.sum(out[:, 0, 0]) / count


# ---------------- pure-JAX reference (direct transcription of the torch code) ----------------

def _triplet_loss_ref(im, rec, margin=MARGIN):
    im_n = im / jnp.maximum(jnp.linalg.norm(im, axis=-1, keepdims=True), EPS)
    rec_n = rec / jnp.maximum(jnp.linalg.norm(rec, axis=-1, keepdims=True), EPS)
    scores = 1.0 - im_n @ rec_n.T
    B = im.shape[0]
    d1 = jnp.diag(scores)[:, None]
    cost_im = jnp.maximum(0.0, d1 - scores + margin)
    cost_rec = jnp.maximum(0.0, d1.T - scores + margin)
    eye = jnp.eye(B, dtype=bool)
    cost_im = jnp.where(eye, 0.0, cost_im)
    cost_rec = jnp.where(eye, 0.0, cost_rec)
    return jnp.sum(cost_rec + cost_im) / (B - 1)


def _multi_triplet_loss_ref(target_dict, margin=MARGIN):
    keys = list(target_dict.keys())
    losses = jnp.float32(0.0)
    count = 0
    for src_key in keys:                      # mutate-while-iterating, as in torch
        keys.remove(src_key)
        if not len(keys):
            break
        for tgt_key in keys:
            losses = losses + _triplet_loss_ref(
                target_dict[src_key], target_dict[tgt_key], margin)
            count += 1
    return losses / count


if __name__ == "__main__":
    key = jax.random.PRNGKey(0)
    B, D = 8, 32
    names = ["image", "recipe", "title"]
    subkeys = jax.random.split(key, len(names))
    target_dict = {n: jax.random.normal(k, (B, D), dtype=jnp.float32)
                   for n, k in zip(names, subkeys)}

    loss = jax.block_until_ready(multi_triplet_loss(target_dict))
    ref = jax.block_until_ready(_multi_triplet_loss_ref(target_dict))
    assert jnp.allclose(loss, ref, rtol=1e-5, atol=1e-5), (loss, ref)
    print("KERNEL_OK")
</pallas_src>

<mosaic_0001>
module attributes {stable_mosaic.version = 11 : i64} {
  func.func @_pair_triplet_kernel(%arg0: i32, %arg1: memref<3xi32, #tpu.memory_space<smem>>, %arg2: memref<3xi32, #tpu.memory_space<smem>>, %arg3: memref<1x8x32xf32, #tpu.memory_space<vmem>>, %arg4: memref<1x8x32xf32, #tpu.memory_space<vmem>>, %arg5: memref<1x8x128xf32, #tpu.memory_space<vmem>>) attributes {dimension_semantics = [#tpu.dimension_semantics<parallel>], iteration_bounds = array<i64: 3>, scalar_prefetch = 2 : i64, scratch_operands = 0 : i64, tpu.core_type = #tpu.core_type<tc>, window_params = [{transform_indices = @transform_0, window_bounds = array<i64: 1, 8, 32>}, {transform_indices = @transform_1, window_bounds = array<i64: 1, 8, 32>}, {transform_indices = @transform_2, window_bounds = array<i64: 1, 8, 128>}]} {
    %c0 = arith.constant 0 : index
    %c0_0 = arith.constant 0 : index
    %c0_1 = arith.constant 0 : index
    %0 = vector.load %arg3[%c0, %c0_0, %c0_1] : memref<1x8x32xf32, #tpu.memory_space<vmem>>, vector<1x8x32xf32>
    %1 = vector.shape_cast %0 : vector<1x8x32xf32> to vector<8x32xf32>
    %c0_2 = arith.constant 0 : index
    %c0_3 = arith.constant 0 : index
    %c0_4 = arith.constant 0 : index
    %2 = vector.load %arg4[%c0_2, %c0_3, %c0_4] : memref<1x8x32xf32, #tpu.memory_space<vmem>>, vector<1x8x32xf32>
    %3 = vector.shape_cast %2 : vector<1x8x32xf32> to vector<8x32xf32>
    %4 = arith.mulf %1, %1 : vector<8x32xf32>
    %cst = arith.constant dense<0.000000e+00> : vector<8xf32>
    %5 = vector.multi_reduction <add>, %4, %cst [1] : vector<8x32xf32> to vector<8xf32>
    %6 = vector.shape_cast %5 : vector<8xf32> to vector<8x1xf32>
    %cst_5 = arith.constant 1.000000e-24 : f32
    %7 = vector.broadcast %cst_5 : f32 to vector<8x1xf32>
    %8 = arith.maximumf %6, %7 : vector<8x1xf32>
    %9 = math.rsqrt %8 : vector<8x1xf32>
    %10 = arith.mulf %3, %3 : vector<8x32xf32>
    %cst_6 = arith.constant dense<0.000000e+00> : vector<8xf32>
    %11 = vector.multi_reduction <add>, %10, %cst_6 [1] : vector<8x32xf32> to vector<8xf32>
    %12 = vector.shape_cast %11 : vector<8xf32> to vector<8x1xf32>
    %cst_7 = arith.constant 1.000000e-24 : f32
    %13 = vector.broadcast %cst_7 : f32 to vector<8x1xf32>
    %14 = arith.maximumf %12, %13 : vector<8x1xf32>
    %15 = math.rsqrt %14 : vector<8x1xf32>
    %cst_8 = arith.constant dense<0.000000e+00> : vector<8x8xf32>
    %16 = tpu.matmul %1, %3, %cst_8 {dimension_numbers = #tpu.dot_dimension_numbers<[1], [1], [0], [0], [0, 0, 1, 0], [], []>} : vector<8x32xf32>, vector<8x32xf32>, vector<8x8xf32> -> vector<8x8xf32>
    %17 = vector.broadcast %9 : vector<8x1xf32> to vector<8x8xf32>
    %18 = arith.mulf %16, %17 : vector<8x8xf32>
    %19 = vector.shape_cast %15 : vector<8x1xf32> to vector<1x8xf32>
    %20 = vector.broadcast %19 : vector<1x8xf32> to vector<8x8xf32>
    %21 = arith.mulf %18, %20 : vector<8x8xf32>
    %22 = arith.mulf %1, %3 : vector<8x32xf32>
    %cst_9 = arith.constant dense<0.000000e+00> : vector<8xf32>
    %23 = vector.multi_reduction <add>, %22, %cst_9 [1] : vector<8x32xf32> to vector<8xf32>
    %24 = vector.shape_cast %23 : vector<8xf32> to vector<8x1xf32>
    %25 = arith.mulf %24, %9 : vector<8x1xf32>
    %26 = arith.mulf %25, %15 : vector<8x1xf32>
    %27 = vector.broadcast %26 : vector<8x1xf32> to vector<8x8xf32>
    %28 = arith.subf %21, %27 : vector<8x8xf32>
    %cst_10 = arith.constant 3.000000e-01 : f32
    %29 = vector.broadcast %cst_10 : f32 to vector<8x8xf32>
    %30 = arith.addf %28, %29 : vector<8x8xf32>
    %cst_11 = arith.constant 0.000000e+00 : f32
    %31 = vector.broadcast %cst_11 : f32 to vector<8x8xf32>
    %32 = arith.maximumf %31, %30 : vector<8x8xf32>
    %33 = vector.shape_cast %26 : vector<8x1xf32> to vector<1x8xf32>
    %34 = vector.broadcast %33 : vector<1x8xf32> to vector<8x8xf32>
    %35 = arith.subf %21, %34 : vector<8x8xf32>
    %cst_12 = arith.constant 3.000000e-01 : f32
    %36 = vector.broadcast %cst_12 : f32 to vector<8x8xf32>
    %37 = arith.addf %35, %36 : vector<8x8xf32>
    %cst_13 = arith.constant 0.000000e+00 : f32
    %38 = vector.broadcast %cst_13 : f32 to vector<8x8xf32>
    %39 = arith.maximumf %38, %37 : vector<8x8xf32>
    %40 = tpu.iota {dimensions = array<i32: 0>} : vector<8x8xi32>
    %41 = tpu.iota {dimensions = array<i32: 1>} : vector<8x8xi32>
    %42 = arith.cmpi ne, %40, %41 : vector<8x8xi32>
    %43 = arith.addf %32, %39 : vector<8x8xf32>
    %cst_14 = arith.constant 0.000000e+00 : f32
    %44 = vector.broadcast %cst_14 : f32 to vector<8x8xf32>
    %45 = arith.select %42, %43, %44 : vector<8x8xi1>, vector<8x8xf32>
    %46 = vector.shape_cast %45 : vector<8x8xf32> to vector<1x8x8xf32>
    %cst_15 = arith.constant dense<0.000000e+00> : vector<1xf32>
    %47 = vector.multi_reduction <add>, %46, %cst_15 [1, 2] : vector<1x8x8xf32> to vector<1xf32>
    %48 = vector.shape_cast %47 : vector<1xf32> to vector<1x1x1xf32>
    %49 = vector.extract %48[0, 0, 0] : f32 from vector<1x1x1xf32>
    %cst_16 = arith.constant 7.000000e+00 : f32
    %50 = arith.divf %49, %cst_16 : f32
    %51 = vector.broadcast %50 : f32 to vector<8x128xf32>
    %c0_17 = arith.constant 0 : index
    %c0_18 = arith.constant 0 : index
    %c0_19 = arith.constant 0 : index
    %52 = vector.load %arg5[%c0_17, %c0_18, %c0_19] : memref<1x8x128xf32, #tpu.memory_space<vmem>>, vector<1x8x128xf32>
    %53 = vector.shape_cast %52 : vector<1x8x128xf32> to vector<8x128xf32>
    %54 = vector.shape_cast %51 : vector<8x128xf32> to vector<1x8x128xf32>
    tpu.vector_store %arg5[%c0_17, %c0_18, %c0_19], %54 {strides = array<i32>} : memref<1x8x128xf32, #tpu.memory_space<vmem>>, vector<1x8x128xf32>,
    return
  }
  func.func @transform_0(%arg0: i32, %arg1: memref<3xi32, #tpu.memory_space<smem>>, %arg2: memref<3xi32, #tpu.memory_space<smem>>) -> (i32, i32, i32) {
    %0 = arith.index_cast %arg0 : i32 to index
    %1 = memref.load %arg1[%0] : memref<3xi32, #tpu.memory_space<smem>>
    %c0_i32 = arith.constant 0 : i32
    %c0_i32_0 = arith.constant 0 : i32
    %c0_i32_1 = arith.constant 0 : i32
    return %1, %c0_i32, %c0_i32_0 : i32, i32, i32
  }
  func.func @transform_1(%arg0: i32, %arg1: memref<3xi32, #tpu.memory_space<smem>>, %arg2: memref<3xi32, #tpu.memory_space<smem>>) -> (i32, i32, i32) {
    %0 = arith.index_cast %arg0 : i32 to index
    %1 = memref.load %arg2[%0] : memref<3xi32, #tpu.memory_space<smem>>
    %c0_i32 = arith.constant 0 : i32
    %c0_i32_0 = arith.constant 0 : i32
    %c0_i32_1 = arith.constant 0 : i32
    return %1, %c0_i32, %c0_i32_0 : i32, i32, i32
  }
  func.func @transform_2(%arg0: i32, %arg1: memref<3xi32, #tpu.memory_space<smem>>, %arg2: memref<3xi32, #tpu.memory_space<smem>>) -> (i32, i32, i32) {
    %c0_i32 = arith.constant 0 : i32
    %c0_i32_0 = arith.constant 0 : i32
    %c0_i32_1 = arith.constant 0 : i32
    return %arg0, %c0_i32, %c0_i32_0 : i32, i32, i32
  }
}

</mosaic_0001>

<bundles_post_ra>
// kernel: tpu_custom_call.1
= control target key start
LH: loop header
LB: loop body
LE: loop exit
PB: predicated region body
PF: predicated region fallthrough
CT: control target
= control target key end

     0   :  { %s1170_s0 = inlined_call_operand.hbm [shape: s32[3], index: 0, kind: input, shape index: {}]   ;;  %s1171_s2 = inlined_call_operand.hbm [shape: f32[3,8,32], index: 2, kind: input, shape index: {}]   ;;  %s1172_s3 = inlined_call_operand.hbm [shape: f32[3,8,32], index: 3, kind: input, shape index: {}]   ;;  %s1173_s4 = inlined_call_operand.hbm [shape: f32[3,8,128], index: 4, kind: output, shape index: {}]   ;;  %s1174_s1 = inlined_call_operand.vmem [shape: s32[3], index: 1, kind: input, shape index: {}]  }
   0x1   :  { %1182 = sst [smem:[#allocation22_spill]] %s1171_s2  ;;  %s620_s17 = scalar_lea.hbm %s1170_s0, 16 }
   0x2   :  { %p621_p0 = scmp.ne.s32.totalorder %s1170_s0, %s620_s17  ;;  %p624_p1 = scmp.lt.u32.totalorder %s620_s17, %s1170_s0 }
   0x4   :  { %p626_p2 = pnand %p624_p1, %p621_p0 }
   0x6   :  { %629 = shalt.err (!%p626_p2)  }
   0x7   :  { %s824_s22 = smov [#allocation3]   ;;  %s11_s27 = sshll.u32 %s1174_s1, 4  ;;  %s12_s27 = int_to_ptr.vmem [resolvable:$true] %s11_s27 }
   0x8   :  { %10 = dma.hbm_to_smem %s1170_s0, 16, %s824_s22, [#allocation2] }
   0x9   :  { %s630_s28 = scalar_lea.vmem %s12_s27, 16  ;;  %p635_p4 = scmp.lt.s32.totalorder %s12_s27, %s12_s27 }
   0xa   :  { %p631_p3 = scmp.ne.s32.totalorder %s12_s27, %s630_s28  ;;  %p636_p5 = scmp.lt.s32.totalorder %s630_s28, %s630_s28 }
   0xc   :  { %p637_p6 = por %p636_p5, %p635_p4 }
   0xe   :  { %p638_p7 = pnand %p637_p6, %p631_p3 }
  0x10   :  { %641 = shalt.err (!%p638_p7)  }
  0x11   :  { %s825_s29 = smov [#allocation4]  }
  0x12   :  { %14 = dma.vmem_to_smem %s12_s27, 16, %s825_s29, [#allocation2] }
  0x13   :  { %770 = dma.done.wait [#allocation2], 32 }
  0x14   :  { %771 = vsyncadd [#allocation2], 4294967264 }
  0x15   :  { %16 = sfence }
  0x16   :  { %17 = vsyncpa [#allocation6], 0 }
  0x17   :  { %19 = vsyncpa [#allocation6 + $0x1], 0 }
  0x18   :  { %20 = vsyncpa [#allocation9], 0 }
  0x19   :  { %22 = vsyncpa [#allocation9 + $0x1], 0 }
  0x1a   :  { %23 = vsyncpa [#allocation7], 0 }
  0x1b   :  { %25 = vsyncpa [#allocation7 + $0x1], 0  ;;  %s871_s0 = smov 0   ;;  %s873_s1 = smov 0  }
  0x1c   :  { %s875_s30 = smov 0   ;;  %s877_s5 = smov 0  }
  0x1d   :  { %s879_s6 = smov 0   ;;  %s881_s7 = smov 0  }
  0x1e   :  { %s883_s8 = smov 0   ;;  %s885_s9 = smov 0  }
  0x1f   :  { %s887_s10 = smov 0   ;;  %s889_s11 = smov 0  }
  0x20 LB: > { %1183 = sst [smem:[#allocation19_spill]] %s818_s10  ;;  %s920_s12 = sadd.s32 4294967295, %s822_s11   ;;  %s822_s11 = sphi %s889_s11, %s1217_s11   ;;  %s818_s10 = sphi %s887_s10, %s1216_s10   ;;  %s814_s9 = sphi %s885_s9, %s1215_s9   ;;  %s810_s8 = sphi %s883_s8, %s1214_s8   ;;  %s806_s7 = sphi %s881_s7, %s1213_s7   ;;  %s802_s6 = sphi %s879_s6, %s1212_s6   ;;  %s798_s5 = sphi %s877_s5, %s1211_s5   ;;  %s794_s30 = sphi %s875_s30, %s1210_s30   ;;  %s790_s1 = sphi %s873_s1, %s1209_s1   ;;  %s786_s0 = sphi %s871_s0, %s1208_s0  }
  0x21   : > { %s479_s13 = sadd.s32 4294967294, %s822_s11   ;;  %s924_s14 = sadd.s32 1, %s822_s11  }
  0x22   : > { %s35_s15 = sld [smem:[#allocation3 + %s822_s11]]  ;;  %s40_s17 = sadd.s32 1, %s818_s10 }
  0x23   : > { %s36_s16 = sld [smem:[#allocation3 + %s924_s14]]  ;;  %p47_p8 = scmp.ne.s32.totalorder %s818_s10, %s814_s9 }
  0x24   : > { %p1177_p9 = scmp.eq.s32.totalorder %s822_s11, 0  ;;  %p53_p10 = scmp.ne.s32.totalorder %s814_s9, %s810_s8 }
  0x25   : > { %p1178_p11 = scmp.eq.s32.totalorder %s920_s12, 0  ;;  %s91_s19 = ssub.s32 %s822_s11, %s924_s14 }
  0x26   : > { %p936_p12 = por %p1177_p9, %p47_p8  ;;  %p92_p0 = scmp.eq.s32.totalorder %s91_s19, 0 }
  0x27   : > { %p944_p13 = por %p1178_p11, %p53_p10  ;;  %s94_s21 = sadd.s32 1, %s794_s30 }
  0x28   : > { %p104_p1 = scmp.ne.s32.totalorder %s794_s30, %s790_s1  ;;  %p105_p2 = scmp.eq.s32.totalorder %s920_s12, 2 }
  0x29   : > { %s1185_s20 = scalar_select %p944_p13, 1, 0 }
  0x2a   : > { %s37_s22 = ssub.s32 %s35_s15, %s36_s16  ;;  %p110_p4 = scmp.ne.s32.totalorder %s790_s1, %s786_s0 }
  0x2b   : > { %p38_p3 = scmp.eq.s32.totalorder %s37_s22, 0  ;;  %p960_p5 = por %p105_p2, %p104_p1 }
  0x2c   : > { %s955_s23 = scalar_select %p92_p0, %s794_s30, %s94_s21  }
  0x2d   : > { %s958_s24 = scalar_select %p38_p3, %s818_s10, %s40_s17  }
  0x2e   : > { %1186 = sst [smem:[#allocation20_spill]] %s955_s23  ;;  %p111_p6 = scmp.eq.s32.totalorder %s479_s13, 2 }
  0x2f   : > { %1187 = sst [smem:[#allocation21_spill]] %s958_s24  ;;  %p1176_p7 = scmp.lt.s32.totalorder %s822_s11, 3 }
  0x30   : > { %s1188_s25 = scalar_select %p960_p5, 1, 0 }
  0x31   : > { %p965_p8 = por %p111_p6, %p110_p4  ;;  %s131_s27 = sand.u32 1, %s818_s10  }
  0x32   : > { %s482_s28 = sshll.u32 %s131_s27, 3  ;;  %p974_p10 = pnand %p1176_p7, %p936_p12 }
  0x33   : > { %s1189_s26 = scalar_select %p965_p8, 1, 0 }
  0x34   : > { %s505_s8 = scalar_select %p936_p12, [#allocation3], [#allocation11] }
  0x35   : > { %s506_s15 = scalar_select %p936_p12, %s822_s11, 0 }
  0x36   : > { %s1219_s8 = smov (!%p1176_p7, %s505_s8), [#allocation13]  ;;  %s135_s13 = scalar_lea.vmem [#allocation5], %s482_s28 }
  0x37   : > { %s1221_s15 = smov (!%p1176_p7, %s506_s15), 0  ;;  %s143_s16 = sshll.u32 %s135_s13, 4  ;;  %s987_s16 = int_to_ptr.vmem [resolvable:$true] %s143_s16 }
  0x38   : > { %s136_s17 = sld [smem:[%s1219_s8 + %s1221_s15]]  ;;  %p486_p0 = scmp.ge.s32.totalorder %s822_s11, 1 }
  0x39   : > { %p167_p1 = scmp.lt.s32.totalorder %s822_s11, 4  ;;  %s996_s21 = sld [smem:[#allocation4 + %s822_s11]] }
  0x3a   : > { %s999_s22 = sld [smem:[#allocation4 + %s924_s14]]  ;;  %s132_s28 = scalar_lea.sflag [#allocation6], %s131_s27 }
  0x3b   : > { %p991_p2 = pnand %p486_p0, %p167_p1  ;;  %s1192_s2 = sld [smem:[#allocation22_spill]] }
  0x3c   : > { %p644_p3 = pneg %p974_p10 }
  0x3e   : > { %s483_s18 = sshll.u32 %s136_s17, 7 }
  0x41   : > { %s1004_s23 = scalar_lea.hbm %s1192_s2, %s483_s18  ;;  %s647_s17 = scalar_lea.hbm %s1192_s2, 384 }
  0x42   : > { %s642_s8 = scalar_lea.hbm %s1004_s23, 128  ;;  %p648_p0 = scmp.lt.u32.totalorder %s1004_s23, %s1192_s2 }
  0x43   : > { %p643_p12 = scmp.ne.s32.totalorder %s1004_s23, %s642_s8  ;;  %p649_p1 = scmp.lt.u32.totalorder %s647_s17, %s642_s8 }
  0x44   : > { %p651_p9 = scmp.lt.u32.totalorder %s642_s8, %s1004_s23 }
  0x45   : > { %p645_p4 = pnand %p644_p3, %p643_p12  ;;  %p650_p7 = por %p649_p1, %p648_p0 }
  0x47   : > { %p646_p6 = pneg %p645_p4  ;;  %p652_p11 = por %p651_p9, %p650_p7 }
  0x49   : > { %p653_p8 = pnand %p652_p11, %p646_p6 }
  0x4b   : > { %656 = shalt.err (!%p653_p8)
}
  0x4c   : > { %s657_s27 = scalar_lea.vmem %s987_s16, 128  ;;  %s826_s18 = smov [#allocation5]  }
  0x4d   : > { %p658_p12 = scmp.ne.s32.totalorder %s987_s16, %s657_s27  ;;  %s662_s15 = sshll.u32 %s826_s18, 4  ;;  %s663_s15 = int_to_ptr.vmem [resolvable:$false] %s662_s15 }
  0x4e   : > { %s664_s13 = scalar_lea.vmem %s663_s15, 256  ;;  %p665_p13 = scmp.lt.s32.totalorder %s987_s16, %s663_s15 }
  0x4f   : > { %p660_p4 = pnand %p658_p12, %p644_p3  ;;  %p666_p0 = scmp.lt.s32.totalorder %s664_s13, %s657_s27 }
  0x51   : > { %p661_p5 = pneg %p660_p4  ;;  %p667_p1 = por %p666_p0, %p665_p13 }
  0x53   : > { %p668_p9 = pnand %p667_p1, %p661_p5 }
  0x55   : > { %671 = shalt.err (!%p668_p9)
}
  0x56   : > { %520 = dma.hbm_to_vmem [thread:$0]  (!%p974_p10), %s1004_s23, 128, %s987_s16, %s132_s28  }
  0x57   : > { %p75_p11 = scmp.ne.s32.totalorder %s806_s7, %s802_s6  ;;  %p81_p13 = scmp.ne.s32.totalorder %s802_s6, %s798_s5 }
  0x58   : > { %s68_s29 = sadd.s32 1, %s806_s7  ;;  %p1193_p5 = scmp.eq.s32.totalorder %s920_s12, 0 }
  0x59   : > { %s150_s17 = sand.u32 1, %s806_s7   ;;  %s65_s10 = ssub.s32 %s996_s21, %s999_s22 }
  0x5a   : > { %p1038_p7 = por %p81_p13, %p1193_p5  ;;  %p1195_p8 = scmp.eq.s32.totalorder %s822_s11, 0 }
  0x5b   : > { %p66_p6 = scmp.eq.s32.totalorder %s65_s10, 0  ;;  %s484_s24 = sshll.u32 %s150_s17, 3 }
  0x5c   : > { %s1194_s8 = scalar_select %p1038_p7, 1, 0 }
  0x5d   : > { %p77_p3 = por %p75_p11, %p1195_p8  ;;  %p1196_p12 = scmp.lt.s32.totalorder %s822_s11, 3 }
  0x5e   : > { %s1054_s5 = scalar_select %p66_p6, %s806_s7, %s68_s29  }
  0x5f   : > { %p1049_p4 = pnand %p1196_p12, %p77_p3  ;;  %p1198_p10 = pmov %p1196_p12 }
  0x60   : > { %s508_s23 = scalar_select %p77_p3, [#allocation4], [#allocation12] }
  0x61   : > { %s509_s16 = scalar_select %p77_p3, %s822_s11, 0 }
  0x62   : > { %s1223_s23 = smov (!%p1198_p10, %s508_s23), [#allocation14]  ;;  %p1199_p0 = pmov %p1198_p10 }
  0x63   : > { %s154_s22 = scalar_lea.vmem [#allocation8], %s484_s24  ;;  %s151_s29 = scalar_lea.sflag [#allocation9], %s150_s17 }
  0x64   : > { %s1225_s16 = smov (!%p1199_p0, %s509_s16), 0  ;;  %s162_s28 = sshll.u32 %s154_s22, 4  ;;  %s1061_s28 = int_to_ptr.vmem [resolvable:$true] %s162_s28 }
  0x65   : > { %s155_s21 = sld [smem:[%s1223_s23 + %s1225_s16]]  ;;  %p674_p9 = pneg %p1049_p4 }
  0x66   : > { %s677_s16 = scalar_lea.hbm %s1172_s3, 384 }
  0x6b   : > { %s485_s18 = sshll.u32 %s155_s21, 7 }
  0x6c   : > { %s1066_s10 = scalar_lea.hbm %s1172_s3, %s485_s18 }
  0x6d   : > { %s672_s2 = scalar_lea.hbm %s1066_s10, 128  ;;  %p678_p5 = scmp.lt.u32.totalorder %s1066_s10, %s1172_s3 }
  0x6e   : > { %p673_p1 = scmp.ne.s32.totalorder %s1066_s10, %s672_s2  ;;  %p679_p8 = scmp.lt.u32.totalorder %s677_s16, %s672_s2 }
  0x6f   : > { %p681_p6 = scmp.lt.u32.totalorder %s672_s2, %s1066_s10 }
  0x70   : > { %p675_p11 = pnand %p674_p9, %p673_p1  ;;  %p680_p3 = por %p679_p8, %p678_p5 }
  0x72   : > { %p676_p13 = pneg %p675_p11  ;;  %p682_p12 = por %p681_p6, %p680_p3 }
  0x74   : > { %p683_p10 = pnand %p682_p12, %p676_p13 }
  0x76   : > { %686 = shalt.err (!%p683_p10)
}
  0x77   : > { %s687_s17 = scalar_lea.vmem %s1061_s28, 128  ;;  %s827_s18 = smov [#allocation8]  }
  0x78   : > { %p688_p0 = scmp.ne.s32.totalorder %s1061_s28, %s687_s17  ;;  %s692_s15 = sshll.u32 %s827_s18, 4  ;;  %s693_s15 = int_to_ptr.vmem [resolvable:$false] %s692_s15 }
  0x79   : > { %s694_s13 = scalar_lea.vmem %s693_s15, 256  ;;  %p695_p7 = scmp.lt.s32.totalorder %s1061_s28, %s693_s15 }
  0x7a   : > { %p690_p1 = pnand %p688_p0, %p674_p9  ;;  %p696_p5 = scmp.lt.s32.totalorder %s694_s13, %s687_s17 }
  0x7c   : > { %p691_p11 = pneg %p690_p1  ;;  %p697_p8 = por %p696_p5, %p695_p7 }
  0x7e   : > { %p698_p3 = pnand %p697_p8, %p691_p11 }
  0x80   : > { %701 = shalt.err (!%p698_p3)
}
  0x81   : > { %525 = dma.hbm_to_vmem [thread:$0]  (!%p1049_p4), %s1066_s10, 128, %s1061_s28, %s151_s29  }
  0x82   : > { %171 = sbr.rel (%p991_p2) target bundleno = 594 (0x252), region = 28  ;;  %s173_s2 = sand.u32 (!%p991_p2), 1, %s814_s9  }
  0x83   : > { %s487_s24 = sshll.u32 (!%p991_p2), %s173_s2, 3  ;;  %s174_s23 = scalar_lea.sflag (!%p991_p2), [#allocation6], %s173_s2 }
  0x84   : > { %s177_s16 = scalar_lea.vmem (!%p991_p2), [#allocation5], %s487_s24  ;;  %p1200_p9 = scmp.ne.s32.totalorder (!%p991_p2), %s1185_s20, 0 }
  0x89   : > { %773 = dma.done.wait (%p1200_p9), %s174_s23, 128  }
  0x8a   : > { %775 = vsyncadd (%p1200_p9), %s174_s23, 4294967168  ;;  %s182_s27 = sand.u32 1, %s802_s6   ;;  %p1201_p7 = scmp.ne.s32.totalorder %s1194_s8, 0 }
  0x8b   : > { %s488_s21 = sshll.u32 %s182_s27, 3  ;;  %s183_s22 = scalar_lea.sflag [#allocation9], %s182_s27 }
  0x8c   : > { %s186_s28 = scalar_lea.vmem [#allocation8], %s488_s21 }
  0x8d   : > { %777 = dma.done.wait (%p1201_p7), %s183_s22, 128  }
  0x8e   : > { %779 = vsyncadd (%p1201_p7), %s183_s22, 4294967168  ;;  %v828_v0 = vmov 0.0   ;;  %vm829_vm0 = vmmov 0   ;;  %vm217_vm1 = vcmask 261120   ;;  %v215_v1 = vld [vmem:[%s186_s28] sm:$0xff]  ;;  %v214_v2 = vld [vmem:[%s177_s16] sm:$0xff]  ;;  %v307_v13 = vlaneseq }
  0x8f   : > { %498 = vmatprep.subr.mxu0 %v828_v0  ;;  %500 = vmatprep.mubr.msk.f32.mxu0 %vm829_vm0, %v828_v0  ;;  %v216_v3 = vmul.f32 %v214_v2, %v214_v2  ;;  %v223_v4 = vmul.f32 %v215_v1, %v215_v1  ;;  %v327_v5 = vmul.f32 %v215_v1, %v214_v2  ;;  %vm356_vm3 = vcmask 64512   ;;  %s209_s20 = sand.u32 1, %s790_s1   ;;  %s493_s29 = sshll.u32 %s920_s12, 7 }
  0x90   : > { %499 = vmatpush3.xpose.msk.msra.mxu0 %vm217_vm1, %v215_v1  ;;  %v308_v14 = vand.u32 127, %v307_v13  ;;  %v310_v15 = vshrl.u32 %v307_v13, 7  ;;  %s489_s19 = sshll.u32 %s209_s20, 3  ;;  %s1110_s2 = scalar_lea.hbm %s1173_s4, %s493_s29 }
  0x91   : > { %v218_v6 = vsel %vm217_vm1, %v216_v3, 0.0  ;;  %v328_v7 = vsel %vm217_vm1, %v327_v5, 0.0  ;;  %v224_v8 = vsel %vm217_vm1, %v223_v4, 0.0  ;;  %s211_s8 = scalar_lea.vmem [#allocation10], %s489_s19  ;;  %s373_s24 = scalar_lea.sflag [#allocation7], %s209_s20 }
  0x92   : > { %219 = vadd.xlane.f32.xlu0 %v218_v6  ;;  %329 = vadd.xlane.f32.xlu1 %v328_v7  ;;  %v311_v18 = vsub.s32 %v308_v14, %v310_v15  ;;  %vm353_vm2 = vcmp.ne.s32.totalorder %v310_v15, %v308_v14  ;;  %s386_s10 = sshll.u32 %s211_s8, 4  ;;  %p1202_p4 = scmp.ne.s32.totalorder %s1188_s25, 0  ;;  %s1112_s10 = int_to_ptr.vmem [resolvable:$true] %s386_s10 }
  0x93   : > { %501 = vmatmul.mubr.msk.f32.vlgmr.msra.gmra.mrb[0].mxu0 %vm217_vm1, %v214_v2  ;;  %s702_s23 = scalar_lea.vmem %s1112_s10, 128  ;;  %s830_s12 = smov [#allocation10]  }
  0x94   : > { %p703_p2 = scmp.ne.s32.totalorder %s1112_s10, %s702_s23  ;;  %s706_s16 = sshll.u32 %s830_s12, 4  ;;  %s707_s16 = int_to_ptr.vmem [resolvable:$false] %s706_s16 }
  0x95   : > { %s708_s27 = scalar_lea.vmem %s707_s16, 256  ;;  %p709_p12 = scmp.lt.s32.totalorder %s1112_s10, %s707_s16 }
  0x96   : > { %225 = vadd.xlane.f32.xlu0 %v224_v8  ;;  %p704_p13 = pnand %p703_p2, %p1202_p4  ;;  %p710_p10 = scmp.lt.s32.totalorder %s708_s27, %s702_s23 }
  0x98   : > { %p705_p6 = pneg %p704_p13  ;;  %p711_p0 = por %p710_p10, %p709_p12 }
  0x9a   : > { %p712_p1 = pnand %p711_p0, %p705_p6 }
 0x11f   : > { %v220_v9 = vpop.xlane.xlu0 %219  ;;  %v330_v17 = vpop.xlane.xlu1 %329 }
 0x120   : > { %v221_v10 = vmax.f32 %v220_v9, 1e-24 }
 0x122   : > { %616 = vrsqrt.f32 %v221_v10 }
 0x123   : > { %v226_v11 = vpop.xlane.xlu0 %225 }
 0x124   : > { %v227_v12 = vmax.f32 %v226_v11, 1e-24 }
 0x126   : > { %618 = vrsqrt.f32 %v227_v12 }
 0x12c   : > { %v617_v16 = vpop.eup %616 }
 0x12d   : > { %v331_v19 = vmul.f32 %v617_v16, %v330_v17 }
 0x130   : > { %v619_v20 = vpop.eup %618 }
 0x131   : > { %v332_v21 = vmul.f32 %v619_v20, %v331_v19  ;;  %v312_v22 = vrot.slane %v619_v20, %v311_v18 }
 0x133   : > { %v340_v26 = vrot.slane %v332_v21, %v311_v18 }
 0x166   : > { %v301_v23 = vpop.f32.mrb[0].mxu0 }
 0x167   : > { %v305_v24 = vmul.f32 %v617_v16, %v301_v23  ;;  %v502_v25 = vpop.f32.mrb[1].mxu0 }
 0x169   : > { %v326_v27 = vmul.f32 %v312_v22, %v305_v24 }
 0x16b   : > { %v333_v28 = vsub.f32 %v326_v27, %v332_v21  ;;  %v348_v29 = vsub.f32 %v326_v27, %v340_v26 }
 0x16d   : > { %v334_v30 = vadd.f32 0.3, %v333_v28  ;;  %v349_v31 = vadd.f32 0.3, %v348_v29 }
 0x16f   : > { %v335_v32 = vmax.f32 %v334_v30, 0.0  ;;  %v350_v33 = vmax.f32 %v349_v31, 0.0 }
 0x171   : > { %v354_v34 = vadd.f32 %v350_v33, %v335_v32 }
 0x173   : > { %v355_v35 = vsel %vm353_vm2, %v354_v34, 0.0 }
 0x174   : > { %v357_v36 = vsel %vm356_vm3, %v355_v35, 0.0 }
 0x175   : > { %358 = vadd.xlane.f32.xlu1 %v357_v36 }
 0x202   : > { %v359_v37 = vpop.xlane.xlu1 %358 }
 0x203   : > { %v360_v38 = vrot.slane %v359_v37, 4 }
 0x205   : > { %v361_v39 = vadd.f32 %v360_v38, %v359_v37 }
 0x207   : > { %v362_v40 = vrot.slane %v361_v39, 2 }
 0x209   : > { %v363_v41 = vadd.f32 %v362_v40, %v361_v39 }
 0x20b   : > { %v364_v42 = vrot.slane %v363_v41, 1 }
 0x20d   : > { %v365_v43 = vadd.f32 %v364_v42, %v363_v41 }
 0x20f   : > { %503 = vpush %v365_v43 }
 0x240   : > { %s504_s17 = spop %503 }
 0x241   : > { %s369_s18 = smul.f32 0.14285715, %s504_s17 }
 0x243   : > { %v370_v44 = vstv %s369_s18 }
 0x244   : > { %371 = vst [vmem:[%s211_s8] sm:$0xff] %v370_v44 }
 0x245   : > { %715 = shalt.err (!%p712_p1)
}
 0x246   : > { %s716_s21 = scalar_lea.hbm %s1110_s2, 128  ;;  %s720_s20 = scalar_lea.hbm %s1173_s4, 384 }
 0x247   : > { %p717_p11 = scmp.ne.s32.totalorder %s1110_s2, %s716_s21  ;;  %p721_p3 = scmp.lt.u32.totalorder %s1110_s2, %s1173_s4 }
 0x248   : > { %p722_p9 = scmp.lt.u32.totalorder %s720_s20, %s716_s21  ;;  %p724_p2 = scmp.lt.u32.totalorder %s716_s21, %s1110_s2 }
 0x249   : > { %p718_p5 = pnand %p717_p11, %p1202_p4 }
 0x24a   : > { %p723_p7 = por %p722_p9, %p721_p3 }
 0x24b   : > { %p719_p8 = pneg %p718_p5 }
 0x24c   : > { %p725_p13 = por %p724_p2, %p723_p7 }
 0x24e   : > { %p726_p6 = pnand %p725_p13, %p719_p8 }
 0x250   : > { %729 = shalt.err (!%p726_p6)
}
 0x251   : > { %513 = dma.vmem_to_hbm [thread:$0]  (%p1202_p4), %s1112_s10, 128, %s1110_s2, %s373_s24  }
 0x252 PF: > { %p531_p12 = scmp.ge.s32.totalorder %s822_s11, 2  ;;  %s398_s29 = sand.u32 1, %s786_s0  }
 0x253   : > { %p1203_p10 = scmp.ne.s32.totalorder %s1189_s26, 0  ;;  %s399_s17 = scalar_lea.sflag [#allocation7], %s398_s29 }
 0x255   : > { %p527_p0 = pnand %p531_p12, %p1203_p10 }
 0x257   : > { %781 = dma.done.wait (!%p527_p0), %s399_s17, 128  }
 0x258   : > { %783 = vsyncadd (!%p527_p0), %s399_s17, 4294967168  ;;  %s1204_s18 = sld [smem:[#allocation20_spill]]  ;;  %s1205_s25 = smov %s1054_s5 }
 0x259   : > { %s1206_s10 = sld [smem:[#allocation19_spill]]  ;;  %s1207_s15 = sld [smem:[#allocation21_spill]] }
 0x25a   : > { %p28_p4 = scmp.ge.s32.totalorder %s924_s14, 5   ;;  %s1208_s0 = smov %s790_s1 }
 0x25b   : > { %s1209_s1 = smov %s794_s30  ;;  %s1211_s5 = smov %s802_s6 }
 0x25c   : > { %s1212_s6 = smov %s806_s7  ;;  %s1213_s7 = smov %s1205_s25 }
 0x25d   : > { %s1214_s8 = smov %s814_s9  ;;  %s1217_s11 = smov %s924_s14 }
 0x25e   : > { %s1210_s30 = smov %s1204_s18  ;;  %30 = sbr.rel (!%p28_p4) target bundleno = 32 (0x20), region = 86 }
 0x25f   : > { %s1215_s9 = smov %s1206_s10  ;;  %s1216_s10 = smov %s1207_s15 }
 0x265   :  { %404 = vsyncpa [#allocation6], 1 }
 0x266   :  { %406 = vsyncpa [#allocation6 + $0x1], 1 }
 0x267   :  { %407 = vsyncpa [#allocation9], 1 }
 0x268   :  { %409 = vsyncpa [#allocation9 + $0x1], 1 }
 0x269   :  { %410 = vsyncpa [#allocation7], 1 }
 0x26a   :  { %412 = vsyncpa [#allocation7 + $0x1], 1 }

</bundles_post_ra>
